<compile_context>
chip_gen: v7x
topology: tpu7x:2x2x1
jax: 0.10.0
libtpu: 0.0.40
codegen_flags: <defaults>
</compile_context>

<pallas_src>
import functools

import jax
import jax.numpy as jnp
from jax.experimental import pallas as pl
from jax.experimental.pallas import tpu as pltpu


def _bert_output_kernel(x_ref, w_ref, b_ref, res_ref, g_ref, beta_ref, o_ref,
                        *, eps, inv_h):
    # Cast to bf16 inside the kernel (no standalone XLA cast pass over HBM);
    # if the producer already supplies bf16 this is a no-op.
    x = x_ref[...].astype(jnp.bfloat16)
    # Dense: bf16 x @ bf16 W^T on the MXU, fp32 accumulate; bias add in fp32.
    h = jnp.dot(x, w_ref[...], preferred_element_type=jnp.float32)
    h = h + b_ref[...]                                     # (tm, H) + (1, H)

    # Residual add performed in bfloat16, matching the PyTorch
    # (h.bfloat16() + input_tensor.bfloat16()) casts.
    h_bf16 = h.astype(jnp.bfloat16) + res_ref[...].astype(jnp.bfloat16)

    # LayerNorm over the hidden axis; statistics in fp32, one reduction pass.
    xf = h_bf16.astype(jnp.float32)
    s1 = jnp.sum(xf, axis=-1, keepdims=True)
    s2 = jnp.sum(xf * xf, axis=-1, keepdims=True)
    mean = s1 * inv_h
    var = jnp.maximum(s2 * inv_h - mean * mean, 0.0)   # clamp fp32 cancellation
    inv_std = jax.lax.rsqrt(var + eps)
    y = (xf - mean) * inv_std * g_ref[...] + beta_ref[...]

    o_ref[...] = y.astype(o_ref.dtype)


def _tpu_budget():
    """Generation-aware tiling / VMEM budget.

    v5e / v6e: 128 MiB VMEM, 1 TensorCore -> big tiles, deep pipeline.
    v7x: 64 MiB VMEM per TC, 2 TensorCores -> capped tiles, even step counts.
    """
    try:
        vmem = pltpu.get_tpu_info().vmem_capacity_bytes
    except Exception:  # fall back to the most conservative (v7x-like) budget
        vmem = 64 * 1024 * 1024
    if vmem >= 100 * 1024 * 1024:          # v5e / v6e (128 MiB physical)
        return dict(tm_cap=1024, vmem_limit=96 * 1024 * 1024, buf_depth=3,
                    num_cores=1)
    return dict(tm_cap=512, vmem_limit=48 * 1024 * 1024, buf_depth=2,
                num_cores=2)               # v7x (64 MiB per TC, 2 TCs)


def _pick_row_tile(m, cap, num_cores):
    """Largest row tile (multiple of 8, <= cap) that divides M exactly,
    preferring step counts that are a multiple of num_cores (v7x megacore)."""
    if m < 16:
        return m                            # full extent: always legal
    limit = min(cap, m)
    limit -= limit % 8
    if limit <= 0:
        return m
    for want_balanced in (True, False):
        for tm in range(limit, 7, -8):
            if m % tm:
                continue
            steps = m // tm
            if want_balanced and steps % num_cores:
                continue
            return tm
    # No exact divisor: ragged last block (padded rows stay finite thanks to
    # the variance clamp and are discarded by the output slice).
    return limit


def prepare_bert_output_params(weight, bias, ln_gamma, ln_beta):
    """One-time (weight-load-time) parameter prep.

    weight: [H, K] (PyTorch Linear layout) -> stored transposed [K, H] bf16 so
    the kernel does x @ W without a per-call transpose/cast pass.
    """
    H = weight.shape[0]
    return {
        "w_t": jnp.asarray(weight).T.astype(jnp.bfloat16),           # [K, H]
        "bias": jnp.asarray(bias, jnp.float32).reshape(1, H),
        "gamma": jnp.asarray(ln_gamma, jnp.float32).reshape(1, H),
        "beta": jnp.asarray(ln_beta, jnp.float32).reshape(1, H),
    }


def bert_output(hidden_states, input_tensor, params, *, eps=1e-12, tm=None):
    """hidden_states: [B, S, K] (f32 or bf16); input_tensor: [B, S, H].
    params: output of prepare_bert_output_params().  Returns [B, S, H] bf16.

    Passing bf16 activations / residual from the producer halves HBM read
    traffic; f32 inputs are cast to bf16 inside the kernel (no extra XLA pass).
    """
    B, S, K = hidden_states.shape
    H = input_tensor.shape[-1]
    M = B * S

    x2d = hidden_states.reshape(M, K)        # reshape only; no dtype cast here
    res2d = input_tensor.reshape(M, H)
    w_t = params["w_t"]
    b2d, g2d, beta2d = params["bias"], params["gamma"], params["beta"]
    assert w_t.shape == (K, H)

    budget = _tpu_budget()
    if tm is None:
        tm = _pick_row_tile(M, budget["tm_cap"], budget["num_cores"])
    steps = pl.cdiv(M, tm)
    grid = (steps,)

    kernel = functools.partial(_bert_output_kernel, eps=eps, inv_h=1.0 / H)

    # Constant-index operands: one buffer (their block index never changes).
    # Streamed operands: deeper pipeline on 128 MiB chips, 2-deep on v7x.
    resident = dict(pipeline_mode=pl.Buffered(1))
    depth = max(1, min(budget["buf_depth"], steps))
    streamed = dict(pipeline_mode=pl.Buffered(depth))

    bytes_accessed = (M * K * x2d.dtype.itemsize        # x read
                      + K * H * 2                       # W^T read (bf16)
                      + M * H * res2d.dtype.itemsize    # residual read
                      + M * H * 2                       # output write (bf16)
                      + 3 * H * 4)                      # bias / gamma / beta
    cost = pl.CostEstimate(flops=2 * M * K * H,
                           transcendentals=M,           # one rsqrt per row
                           bytes_accessed=bytes_accessed)

    out2d = pl.pallas_call(
        kernel,
        out_shape=jax.ShapeDtypeStruct((M, H), jnp.bfloat16),
        grid_spec=pltpu.PrefetchScalarGridSpec(
            num_scalar_prefetch=0,
            grid=grid,
            in_specs=[
                pl.BlockSpec((tm, K), lambda i: (i, 0), **streamed),   # x tile
                pl.BlockSpec((K, H), lambda i: (0, 0), **resident),    # W^T
                pl.BlockSpec((1, H), lambda i: (0, 0), **resident),    # bias
                pl.BlockSpec((tm, H), lambda i: (i, 0), **streamed),   # residual
                pl.BlockSpec((1, H), lambda i: (0, 0), **resident),    # gamma
                pl.BlockSpec((1, H), lambda i: (0, 0), **resident),    # beta
            ],
            out_specs=pl.BlockSpec((tm, H), lambda i: (i, 0)),
        ),
        compiler_params=pltpu.CompilerParams(
            dimension_semantics=("parallel",),
            vmem_limit_bytes=budget["vmem_limit"]),
        cost_estimate=cost,
    )(x2d, w_t, b2d, res2d, g2d, beta2d)

    return out2d.reshape(B, S, H)


if __name__ == "__main__":
    # Small shapes consistent with BertOutput: intermediate_size -> hidden_size.
    B, S = 2, 8
    INTERMEDIATE = 512   # config.intermediate_size
    HIDDEN = 128         # config.hidden_size
    EPS = 1e-12          # config.layer_norm_eps

    key = jax.random.PRNGKey(0)
    k_x, k_res, k_w, k_b = jax.random.split(key, 4)

    hidden_states = jax.random.normal(k_x, (B, S, INTERMEDIATE), dtype=jnp.float32)
    input_tensor = jax.random.normal(k_res, (B, S, HIDDEN), dtype=jnp.float32)

    # Deterministic parameter init (synthetic — no checkpoint load).
    dense_weight = (jax.random.normal(k_w, (HIDDEN, INTERMEDIATE), dtype=jnp.float32)
                    * (1.0 / INTERMEDIATE ** 0.5))
    dense_bias = jax.random.normal(k_b, (HIDDEN,), dtype=jnp.float32) * 0.02
    ln_gamma = jnp.ones((HIDDEN,), dtype=jnp.float32)
    ln_beta = jnp.zeros((HIDDEN,), dtype=jnp.float32)

    # One-time weight-load-time prep (pre-transposed / pre-cast W^T).
    params = prepare_bert_output_params(dense_weight, dense_bias, ln_gamma, ln_beta)

    out = bert_output(hidden_states, input_tensor, params, eps=EPS)
    out = jax.block_until_ready(out)

    # Reference A: matches the kernel's deliberate bf16-GEMM numerics (tight).
    xb = hidden_states.reshape(-1, INTERMEDIATE).astype(jnp.bfloat16)
    wb = dense_weight.T.astype(jnp.bfloat16)
    h = jnp.dot(xb, wb, preferred_element_type=jnp.float32) + dense_bias
    h = h.astype(jnp.bfloat16) + input_tensor.reshape(-1, HIDDEN).astype(jnp.bfloat16)
    hf = h.astype(jnp.float32)
    mu = hf.mean(-1, keepdims=True)
    var = ((hf - mu) ** 2).mean(-1, keepdims=True)
    ref = ((hf - mu) * jax.lax.rsqrt(var + EPS) * ln_gamma + ln_beta).astype(jnp.bfloat16)
    ref = ref.reshape(B, S, HIDDEN)

    # Reference B: original f32-GEMM semantics (loose check on the deliberate
    # bf16-matmul numerics change).
    h32 = hidden_states.reshape(-1, INTERMEDIATE) @ dense_weight.T + dense_bias
    h32 = h32.astype(jnp.bfloat16) + input_tensor.reshape(-1, HIDDEN).astype(jnp.bfloat16)
    hf32 = h32.astype(jnp.float32)
    mu32 = hf32.mean(-1, keepdims=True)
    v32 = ((hf32 - mu32) ** 2).mean(-1, keepdims=True)
    ref32 = ((hf32 - mu32) * jax.lax.rsqrt(v32 + EPS) * ln_gamma
             + ln_beta).astype(jnp.bfloat16)
    ref32 = ref32.reshape(B, S, HIDDEN)

    assert out.shape == (B, S, HIDDEN) and out.dtype == jnp.bfloat16
    assert jnp.allclose(out.astype(jnp.float32), ref.astype(jnp.float32),
                        atol=2e-2, rtol=2e-2)
    assert jnp.allclose(out.astype(jnp.float32), ref32.astype(jnp.float32),
                        atol=1e-1, rtol=1e-1)

    print("KERNEL_OK")
</pallas_src>

<mosaic_0001>
module attributes {stable_mosaic.version = 11 : i64} {
  func.func @_bert_output_kernel(%arg0: i32, %arg1: memref<8x512xf32, #tpu.memory_space<vmem>>, %arg2: memref<512x128xbf16, #tpu.memory_space<vmem>>, %arg3: memref<1x128xf32, #tpu.memory_space<vmem>>, %arg4: memref<8x128xf32, #tpu.memory_space<vmem>>, %arg5: memref<1x128xf32, #tpu.memory_space<vmem>>, %arg6: memref<1x128xf32, #tpu.memory_space<vmem>>, %arg7: memref<8x128xbf16, #tpu.memory_space<vmem>>) attributes {dimension_semantics = [#tpu.dimension_semantics<parallel>], iteration_bounds = array<i64: 2>, scalar_prefetch = 0 : i64, scratch_operands = 0 : i64, tpu.core_type = #tpu.core_type<tc>, window_params = [{pipeline_mode = #tpu.pipeline_mode<double_buffered>, transform_indices = @transform_0, window_bounds = array<i64: 8, 512>}, {pipeline_mode = #tpu.pipeline_mode<synchronous>, transform_indices = @transform_1, window_bounds = array<i64: 512, 128>}, {pipeline_mode = #tpu.pipeline_mode<synchronous>, transform_indices = @transform_2, window_bounds = array<i64: 1, 128>}, {pipeline_mode = #tpu.pipeline_mode<double_buffered>, transform_indices = @transform_3, window_bounds = array<i64: 8, 128>}, {pipeline_mode = #tpu.pipeline_mode<synchronous>, transform_indices = @transform_4, window_bounds = array<i64: 1, 128>}, {pipeline_mode = #tpu.pipeline_mode<synchronous>, transform_indices = @transform_5, window_bounds = array<i64: 1, 128>}, {transform_indices = @transform_6, window_bounds = array<i64: 8, 128>}]} {
    %c0 = arith.constant 0 : index
    %c0_0 = arith.constant 0 : index
    %0 = vector.load %arg1[%c0, %c0_0] : memref<8x512xf32, #tpu.memory_space<vmem>>, vector<8x512xf32>
    %1 = arith.truncf %0 : vector<8x512xf32> to vector<8x512xbf16>
    %c0_1 = arith.constant 0 : index
    %c0_2 = arith.constant 0 : index
    %2 = vector.load %arg2[%c0_1, %c0_2] : memref<512x128xbf16, #tpu.memory_space<vmem>>, vector<512x128xbf16>
    %cst = arith.constant dense<0.000000e+00> : vector<8x128xf32>
    %3 = tpu.matmul %1, %2, %cst {dimension_numbers = #tpu.dot_dimension_numbers<[1], [0], [0], [1], [0, 0, 1, 1], [], []>} : vector<8x512xbf16>, vector<512x128xbf16>, vector<8x128xf32> -> vector<8x128xf32>
    %c0_3 = arith.constant 0 : index
    %c0_4 = arith.constant 0 : index
    %4 = vector.load %arg3[%c0_3, %c0_4] : memref<1x128xf32, #tpu.memory_space<vmem>>, vector<1x128xf32>
    %5 = vector.broadcast %4 : vector<1x128xf32> to vector<8x128xf32>
    %6 = arith.addf %3, %5 : vector<8x128xf32>
    %7 = arith.truncf %6 : vector<8x128xf32> to vector<8x128xbf16>
    %c0_5 = arith.constant 0 : index
    %c0_6 = arith.constant 0 : index
    %8 = vector.load %arg4[%c0_5, %c0_6] : memref<8x128xf32, #tpu.memory_space<vmem>>, vector<8x128xf32>
    %9 = arith.truncf %8 : vector<8x128xf32> to vector<8x128xbf16>
    %10 = arith.addf %7, %9 : vector<8x128xbf16>
    %11 = arith.extf %10 : vector<8x128xbf16> to vector<8x128xf32>
    %cst_7 = arith.constant dense<0.000000e+00> : vector<8xf32>
    %12 = vector.multi_reduction <add>, %11, %cst_7 [1] : vector<8x128xf32> to vector<8xf32>
    %13 = vector.shape_cast %12 : vector<8xf32> to vector<8x1xf32>
    %14 = arith.mulf %11, %11 : vector<8x128xf32>
    %cst_8 = arith.constant dense<0.000000e+00> : vector<8xf32>
    %15 = vector.multi_reduction <add>, %14, %cst_8 [1] : vector<8x128xf32> to vector<8xf32>
    %16 = vector.shape_cast %15 : vector<8xf32> to vector<8x1xf32>
    %cst_9 = arith.constant 7.812500e-03 : f32
    %17 = vector.broadcast %cst_9 : f32 to vector<8x1xf32>
    %18 = arith.mulf %13, %17 : vector<8x1xf32>
    %cst_10 = arith.constant 7.812500e-03 : f32
    %19 = vector.broadcast %cst_10 : f32 to vector<8x1xf32>
    %20 = arith.mulf %16, %19 : vector<8x1xf32>
    %21 = arith.mulf %18, %18 : vector<8x1xf32>
    %22 = arith.subf %20, %21 : vector<8x1xf32>
    %cst_11 = arith.constant 0.000000e+00 : f32
    %23 = vector.broadcast %cst_11 : f32 to vector<8x1xf32>
    %24 = arith.maximumf %22, %23 : vector<8x1xf32>
    %cst_12 = arith.constant 9.99999996E-13 : f32
    %25 = vector.broadcast %cst_12 : f32 to vector<8x1xf32>
    %26 = arith.addf %24, %25 : vector<8x1xf32>
    %27 = math.rsqrt %26 : vector<8x1xf32>
    %28 = vector.broadcast %18 : vector<8x1xf32> to vector<8x128xf32>
    %29 = arith.subf %11, %28 : vector<8x128xf32>
    %30 = vector.broadcast %27 : vector<8x1xf32> to vector<8x128xf32>
    %31 = arith.mulf %29, %30 : vector<8x128xf32>
    %c0_13 = arith.constant 0 : index
    %c0_14 = arith.constant 0 : index
    %32 = vector.load %arg5[%c0_13, %c0_14] : memref<1x128xf32, #tpu.memory_space<vmem>>, vector<1x128xf32>
    %33 = vector.broadcast %32 : vector<1x128xf32> to vector<8x128xf32>
    %34 = arith.mulf %31, %33 : vector<8x128xf32>
    %c0_15 = arith.constant 0 : index
    %c0_16 = arith.constant 0 : index
    %35 = vector.load %arg6[%c0_15, %c0_16] : memref<1x128xf32, #tpu.memory_space<vmem>>, vector<1x128xf32>
    %36 = vector.broadcast %35 : vector<1x128xf32> to vector<8x128xf32>
    %37 = arith.addf %34, %36 : vector<8x128xf32>
    %38 = arith.truncf %37 : vector<8x128xf32> to vector<8x128xbf16>
    %c0_17 = arith.constant 0 : index
    %c0_18 = arith.constant 0 : index
    %39 = vector.load %arg7[%c0_17, %c0_18] : memref<8x128xbf16, #tpu.memory_space<vmem>>, vector<8x128xbf16>
    tpu.vector_store %arg7[%c0_17, %c0_18], %38 {strides = array<i32>} : memref<8x128xbf16, #tpu.memory_space<vmem>>, vector<8x128xbf16>,
    return
  }
  func.func @transform_0(%arg0: i32) -> (i32, i32) {
    %c0_i32 = arith.constant 0 : i32
    %c0_i32_0 = arith.constant 0 : i32
    return %arg0, %c0_i32 : i32, i32
  }
  func.func @transform_1(%arg0: i32) -> (i32, i32) {
    %c0_i32 = arith.constant 0 : i32
    %c0_i32_0 = arith.constant 0 : i32
    %c0_i32_1 = arith.constant 0 : i32
    return %c0_i32, %c0_i32_0 : i32, i32
  }
  func.func @transform_2(%arg0: i32) -> (i32, i32) {
    %c0_i32 = arith.constant 0 : i32
    %c0_i32_0 = arith.constant 0 : i32
    %c0_i32_1 = arith.constant 0 : i32
    return %c0_i32, %c0_i32_0 : i32, i32
  }
  func.func @transform_3(%arg0: i32) -> (i32, i32) {
    %c0_i32 = arith.constant 0 : i32
    %c0_i32_0 = arith.constant 0 : i32
    return %arg0, %c0_i32 : i32, i32
  }
  func.func @transform_4(%arg0: i32) -> (i32, i32) {
    %c0_i32 = arith.constant 0 : i32
    %c0_i32_0 = arith.constant 0 : i32
    %c0_i32_1 = arith.constant 0 : i32
    return %c0_i32, %c0_i32_0 : i32, i32
  }
  func.func @transform_5(%arg0: i32) -> (i32, i32) {
    %c0_i32 = arith.constant 0 : i32
    %c0_i32_0 = arith.constant 0 : i32
    %c0_i32_1 = arith.constant 0 : i32
    return %c0_i32, %c0_i32_0 : i32, i32
  }
  func.func @transform_6(%arg0: i32) -> (i32, i32) {
    %c0_i32 = arith.constant 0 : i32
    %c0_i32_0 = arith.constant 0 : i32
    return %arg0, %c0_i32 : i32, i32
  }
}

</mosaic_0001>

<bundles_post_ra>
// kernel: tpu_custom_call.1
= control target key start
LH: loop header
LB: loop body
LE: loop exit
PB: predicated region body
PF: predicated region fallthrough
CT: control target
= control target key end

     0   :  { %s1484_s0 = inlined_call_operand.hbm [shape: f32[16,512], index: 0, kind: input, shape index: {}]   ;;  %s1485_s1 = inlined_call_operand.hbm [shape: bf16[512,128], index: 1, kind: input, shape index: {}]   ;;  %s1486_s2 = inlined_call_operand.vmem [shape: f32[1,128], index: 2, kind: input, shape index: {}]   ;;  %s1487_s3 = inlined_call_operand.hbm [shape: f32[16,128], index: 3, kind: input, shape index: {}]   ;;  %s1488_s4 = inlined_call_operand.vmem [shape: f32[1,128], index: 4, kind: input, shape index: {}]   ;;  %s1489_s5 = inlined_call_operand.vmem [shape: f32[1,128], index: 5, kind: input, shape index: {}]   ;;  %s1490_s6 = inlined_call_operand.hbm [shape: bf16[16,128], index: 6, kind: output, shape index: {}]  }
   0x1   :  { %1499 = sst [smem:[#allocation15_spill]] %s1484_s0 }
   0x2   :  { %11 = vsyncpa [#allocation3], 0 }
   0x3   :  { %13 = vsyncpa [#allocation3 + $0x1], 0 }
   0x4   :  { %14 = vsyncpa [#allocation6], 0 }
   0x5   :  { %15 = vsyncpa [#allocation4], 0 }
   0x6   :  { %17 = vsyncpa [#allocation4 + $0x1], 0  ;;  %s1221_s21 = smov 0   ;;  %s1223_s22 = smov 0  }
   0x7   :  { %s1225_s23 = smov 0   ;;  %s1227_s24 = smov 0  }
   0x8 LB: > { %1500 = sst [smem:[#allocation13_spill]] %s1174_s23  ;;  %s1242_s25 = sadd.s32 1, %s1178_s24   ;;  %s1178_s24 = sphi %s1227_s24, %s1523_s24   ;;  %s1174_s23 = sphi %s1225_s23, %s1520_s23   ;;  %s1170_s22 = sphi %s1223_s22, %s1522_s22   ;;  %s1166_s21 = sphi %s1221_s21, %s1521_s21  }
   0x9   : > { %s30_s26 = sadd.s32 1, %s1174_s23  ;;  %s27_s27 = ssub.s32 %s1178_s24, %s1242_s25 }
   0xa   : > { %p37_p0 = scmp.ne.s32.totalorder %s1174_s23, %s1170_s22  ;;  %p28_p1 = scmp.eq.s32.totalorder %s27_s27, 0 }
   0xb   : > { %p38_p2 = scmp.eq.s32.totalorder %s1178_s24, 0  ;;  %p944_p4 = scmp.lt.s32.totalorder %s1178_s24, 2 }
   0xc   : > { %s1253_s28 = scalar_select %p28_p1, %s1174_s23, %s30_s26  }
   0xd   : > { %p39_p5 = por %p38_p2, %p37_p0  ;;  %s225_s29 = sand.u32 1, %s1178_s24  }
   0xe   : > { %1501 = sst [smem:[#allocation14_spill]] %s1253_s28  ;;  %s227_s30 = sand.u32 1, %s1174_s23  }
   0xf   : > { %s824_s7 = sshll.u32 %s227_s30, 5  ;;  %s873_s8 = sshll.u32 %s1178_s24, 9 }
  0x10   : > { %s1502_s0 = sld [smem:[#allocation15_spill]]  ;;  %s229_s12 = scalar_lea.vmem [#allocation2], %s824_s7 }
  0x11   : > { %s237_s13 = sshll.u32 %s229_s12, 4  ;;  %p1266_p6 = pnand %p944_p4, %p39_p5  ;;  %s1270_s13 = int_to_ptr.vmem [resolvable:$true] %s237_s13 }
  0x12   : > { %s1272_s15 = sshll.u32 %s227_s30, 3  ;;  %s1274_s16 = scalar_lea.sflag [#allocation3], %s225_s29 }
  0x13   : > { %s1503_s14 = scalar_select %p1266_p6, 1, 0 }
  0x14   : > { %p1493_p8 = pneg %p1266_p6 }
  0x16   : > { %s1264_s11 = scalar_lea.hbm %s1502_s0, %s873_s8  ;;  %s1021_s20 = scalar_lea.hbm %s1502_s0, 1024 }
  0x17   : > { %s1016_s17 = scalar_lea.hbm %s1264_s11, 512  ;;  %p1022_p11 = scmp.lt.u32.totalorder %s1264_s11, %s1502_s0 }
  0x18   : > { %p1017_p7 = scmp.ne.s32.totalorder %s1264_s11, %s1016_s17  ;;  %p1023_p12 = scmp.lt.u32.totalorder %s1021_s20, %s1016_s17 }
  0x19   : > { %p1025_p1 = scmp.lt.u32.totalorder %s1016_s17, %s1264_s11 }
  0x1a   : > { %p1019_p9 = pnand %p1493_p8, %p1017_p7  ;;  %p1024_p13 = por %p1023_p12, %p1022_p11 }
  0x1c   : > { %p1020_p10 = pneg %p1019_p9  ;;  %p1026_p2 = por %p1025_p1, %p1024_p13 }
  0x1e   : > { %p1027_p4 = pnand %p1026_p2, %p1020_p10 }
  0x20   : > { %1030 = shalt.err (!%p1027_p4)
}
  0x21   : > { %s1031_s29 = scalar_lea.vmem %s1270_s13, 512  ;;  %s1180_s30 = smov [#allocation2]  }
  0x22   : > { %p1032_p5 = scmp.ne.s32.totalorder %s1270_s13, %s1031_s29  ;;  %s1036_s7 = sshll.u32 %s1180_s30, 4  ;;  %s1037_s7 = int_to_ptr.vmem [resolvable:$false] %s1036_s7 }
  0x23   : > { %s1038_s8 = scalar_lea.vmem %s1037_s7, 1024  ;;  %p1039_p3 = scmp.lt.s32.totalorder %s1270_s13, %s1037_s7 }
  0x24   : > { %p1034_p7 = pnand %p1032_p5, %p1493_p8  ;;  %p1040_p11 = scmp.lt.s32.totalorder %s1038_s8, %s1031_s29 }
  0x26   : > { %p1035_p9 = pneg %p1034_p7  ;;  %p1041_p12 = por %p1040_p11, %p1039_p3 }
  0x28   : > { %p1042_p13 = pnand %p1041_p12, %p1035_p9 }
  0x2a   : > { %1045 = shalt.err (!%p1042_p13)
}
  0x2b   : > { %935 = dma.hbm_to_vmem [thread:$0]  (!%p1266_p6), %s1264_s11, 512, %s1270_s13, %s1274_s16  }
  0x2c   : > { %s1303_s9 = sadd.s32 4294967295, %s1178_s24   ;;  %s820_s10 = sadd.s32 4294967294, %s1178_s24  }
  0x2d   : > { %p43_p3 = scmp.ne.s32.totalorder %s1170_s22, %s1166_s21  ;;  %p1492_p10 = scmp.eq.s32.totalorder %s1303_s9, 0 }
  0x2e   : > { %p177_p1 = scmp.eq.s32.totalorder %s1303_s9, 1  ;;  %p183_p2 = scmp.eq.s32.totalorder %s820_s10, 1 }
  0x2f   : > { %p821_p4 = scmp.ge.s32.totalorder %s1178_s24, 1  ;;  %p1313_p5 = por %p1492_p10, %p43_p3 }
  0x30   : > { %p1320_p7 = por %p177_p1, %p37_p0  ;;  %p1324_p9 = por %p183_p2, %p43_p3 }
  0x31   : > { %s1504_s12 = scalar_select %p1313_p5, 1, 0 }
  0x32   : > { %s1505_s11 = scalar_select %p1320_p7, 1, 0 }
  0x33   : > { %s1506_s13 = scalar_select %p1324_p9, 1, 0 }
  0x34   : > { %p190_p11 = scmp.lt.s32.totalorder %s1178_s24, 3  ;;  %s1181_s18 = smov [#allocation5]  }
  0x35   : > { %s202_s19 = sshll.u32 %s1181_s18, 4  ;;  %s828_s20 = sshll.u32 %s1178_s24, 7  ;;  %s1333_s19 = int_to_ptr.vmem [resolvable:$true] %s202_s19 }
  0x36   : > { %p1329_p12 = pnand %p821_p4, %p190_p11  ;;  %s1347_s30 = scalar_lea.hbm %s1487_s3, %s828_s20 }
  0x37   : > { %s248_s7 = scalar_lea.vmem [#allocation7], %s1272_s15  ;;  %s1046_s0 = scalar_lea.hbm %s1485_s1, 4096 }
  0x38   : > { %s1507_s17 = scalar_select %p1329_p12, 1, 0 }
  0x39   : > { %p928_p13 = pneg %p1329_p12  ;;  %s255_s8 = sshll.u32 %s248_s7, 4  ;;  %s1350_s8 = int_to_ptr.vmem [resolvable:$true] %s255_s8 }
  0x3a   : > { %p1047_p3 = scmp.ne.s32.totalorder %s1485_s1, %s1046_s0  ;;  %p1053_p11 = scmp.lt.u32.totalorder %s1046_s0, %s1485_s1 }
  0x3b   : > { %p1340_p0 = pnand %p928_p13, %p1492_p10 }
  0x3d   : > { %p1048_p1 = pneg %p1340_p0 }
  0x3f   : > { %p1049_p2 = pnand %p1048_p1, %p1047_p3 }
  0x41   : > { %p1050_p4 = pneg %p1049_p2 }
  0x43   : > { %p1055_p13 = pnand %p1053_p11, %p1050_p4 }
  0x45   : > { %1058 = shalt.err (!%p1055_p13)
}
  0x46   : > { %s1059_s15 = scalar_lea.vmem %s1333_s19, 4096  ;;  %p1067_p7 = scmp.lt.s32.totalorder %s1333_s19, %s1333_s19 }
  0x47   : > { %p1060_p10 = scmp.ne.s32.totalorder %s1333_s19, %s1059_s15  ;;  %p1068_p5 = scmp.lt.s32.totalorder %s1059_s15, %s1059_s15 }
  0x49   : > { %p1062_p8 = pnand %p1060_p10, %p1048_p1  ;;  %p1069_p12 = por %p1068_p5, %p1067_p7 }
  0x4b   : > { %p1063_p9 = pneg %p1062_p8 }
  0x4d   : > { %p1070_p6 = pnand %p1069_p12, %p1063_p9 }
  0x4f   : > { %1073 = shalt.err (!%p1070_p6)
}
  0x50   : > { %s1182_s23 = smov 64   ;;  %s1183_s0 = smov 4  }
  0x51   : > { %931 = dma.hbm_to_vmem [thread:$0]  (!%p1340_p0), %s1485_s1, 4096, %s1333_s19, [#allocation6], %s1182_s23, %s1182_s23, %s1183_s0  }
  0x52   : > { %s1074_s7 = scalar_lea.hbm %s1347_s30, 128  ;;  %p1509_p10 = scmp.ne.s32.totalorder %s1503_s14, 0 }
  0x53   : > { %p1075_p8 = scmp.ne.s32.totalorder %s1347_s30, %s1074_s7  ;;  %s1079_s27 = scalar_lea.hbm %s1487_s3, 256 }
  0x54   : > { %p1510_p5 = pneg %p1509_p10  ;;  %p1080_p9 = scmp.lt.u32.totalorder %s1347_s30, %s1487_s3 }
  0x55   : > { %p1081_p12 = scmp.lt.u32.totalorder %s1079_s27, %s1074_s7  ;;  %p1083_p1 = scmp.lt.u32.totalorder %s1074_s7, %s1347_s30 }
  0x56   : > { %p1077_p7 = pnand %p1075_p8, %p1510_p5 }
  0x57   : > { %p1082_p3 = por %p1081_p12, %p1080_p9 }
  0x58   : > { %p1078_p6 = pneg %p1077_p7 }
  0x59   : > { %p1084_p2 = por %p1083_p1, %p1082_p3 }
  0x5b   : > { %p1085_p4 = pnand %p1084_p2, %p1078_p6 }
  0x5d   : > { %1088 = shalt.err (!%p1085_p4)
}
  0x5e   : > { %s1089_s19 = scalar_lea.vmem %s1350_s8, 128  ;;  %p1511_p11 = pmov %p1510_p5 }
  0x5f   : > { %p1090_p0 = scmp.ne.s32.totalorder %s1350_s8, %s1089_s19  ;;  %s1184_s26 = smov [#allocation7]  }
  0x60   : > { %s1094_s23 = sshll.u32 %s1184_s26, 4  ;;  %s1095_s23 = int_to_ptr.vmem [resolvable:$false] %s1094_s23 }
  0x61   : > { %p1092_p13 = pnand %p1090_p0, %p1511_p11  ;;  %s1096_s0 = scalar_lea.vmem %s1095_s23, 256 }
  0x62   : > { %p1097_p5 = scmp.lt.s32.totalorder %s1350_s8, %s1095_s23  ;;  %p1098_p7 = scmp.lt.s32.totalorder %s1096_s0, %s1089_s19 }
  0x63   : > { %p1093_p8 = pneg %p1092_p13 }
  0x64   : > { %p1099_p9 = por %p1098_p7, %p1097_p5 }
  0x66   : > { %p1100_p12 = pnand %p1099_p9, %p1093_p8 }
  0x68   : > { %1103 = shalt.err (!%p1100_p12)
}
  0x69   : > { %938 = dma.hbm_to_vmem [thread:$0]  (!%p1509_p10), %s1347_s30, 128, %s1350_s8, %s1274_s16  }
  0x6a   : > { %p1512_p6 = scmp.ne.s32.totalorder %s1507_s17, 0 }
  0x6b   : > { %s266_s28 = sand.u32 (!%p1512_p6), 1, %s1303_s9   ;;  %s1401_s20 = sand.u32 (!%p1512_p6), 1, %s1170_s22  }
  0x6c   : > { %264 = sbr.rel (%p1512_p6) target bundleno = 568 (0x238), region = 44  ;;  %s830_s7 = sshll.u32 (!%p1512_p6), %s1401_s20, 5 }
  0x6d   : > { %s267_s10 = scalar_lea.sflag (!%p1512_p6), [#allocation3], %s266_s28  ;;  %s1404_s18 = scalar_lea.vmem (!%p1512_p6), [#allocation2], %s830_s7 }
  0x6e   : > { %p1513_p3 = scmp.ne.s32.totalorder (!%p1512_p6), %s1504_s12, 0 }
  0x73   : > { %1149 = dma.done.wait (%p1513_p3), %s267_s10, 512  }
  0x74   : > { %1151 = vsyncadd (%p1513_p3), %s267_s10, 4294966784  ;;  %p1514_p10 = scmp.eq.s32.totalorder %s1303_s9, 0 }
  0x76   : > { %1153 = dma.done.wait (%p1514_p10), [#allocation6], 4096   ;;  %p1515_p1 = pmov %p1514_p10 }
  0x77   : > { %s832_s14 = sshll.u32 %s1401_s20, 3 }
  0x78   : > { %1155 = vsyncadd (%p1515_p1), [#allocation6], 4294963200  ;;  %s1415_s16 = scalar_lea.vmem [#allocation7], %s832_s14 }
  0x79   : > { %1157 = dma.done.wait (%p1513_p3), %s267_s10, 128  }
  0x7a   : > { %1159 = vsyncadd (%p1513_p3), %s267_s10, 4294967168  ;;  %v982_v0 = vld [vmem:[#allocation5 + $0x40] sm:$0xff]   ;;  %v986_v4 = vld [vmem:[#allocation5 + $0x48] sm:$0xff]   ;;  %s833_s30 = sshll.u32 %s1401_s20, 2  ;;  %s870_s19 = sshll.u32 %s1303_s9, 6 }
  0x7b   : > { %v983_v1 = vld [vmem:[#allocation5 + $0xc0] sm:$0xff]   ;;  %874 = vmatprep.subr.bf16.mxu0 %v982_v0  ;;  %v987_v5 = vld [vmem:[#allocation5 + $0xc8] sm:$0xff]   ;;  %v990_v8 = vld [vmem:[#allocation5 + $0x50] sm:$0xff]   ;;  %s316_s26 = scalar_lea.vmem [#allocation8], %s833_s30  ;;  %s1440_s7 = scalar_lea.hbm %s1490_s6, %s870_s19 }
  0x7c   : > { %v984_v2 = vld [vmem:[#allocation5] sm:$0xff]   ;;  %896 = vmatprep.subr.bf16.mxu1 %v983_v1  ;;  %v988_v6 = vld [vmem:[#allocation5 + $0x8] sm:$0xff]   ;;  %v991_v9 = vld [vmem:[#allocation5 + $0xd0] sm:$0xff]   ;;  %s720_s23 = sshll.u32 %s316_s26, 4  ;;  %s707_s10 = scalar_lea.sflag [#allocation4], %s1401_s20  ;;  %s1442_s23 = int_to_ptr.vmem [resolvable:$true] %s720_s23 }
  0x7d   : > { %v985_v3 = vld [vmem:[#allocation5 + $0x80] sm:$0xff]   ;;  %875 = vmatpush3.bf16.msra.mxu0 %v984_v2  ;;  %v989_v7 = vld [vmem:[#allocation5 + $0x88] sm:$0xff]   ;;  %v992_v10 = vld [vmem:[#allocation5 + $0x10] sm:$0xff]   ;;  %p1516_p4 = scmp.ne.s32.totalorder %s1505_s11, 0  ;;  %s1185_s9 = smov [#allocation8]  }
  0x7e   : > { %897 = vmatpush3.bf16.msra.mxu1 %v985_v3  ;;  %876 = vmatprep.subr.bf16.mxu0 %v986_v4  ;;  %v993_v11 = vld [vmem:[#allocation5 + $0x90] sm:$0xff]   ;;  %v994_v12 = vld [vmem:[#allocation5 + $0x58] sm:$0xff]   ;;  %v998_v16 = vld [vmem:[#allocation5 + $0x60] sm:$0xff]   ;;  %s1108_s14 = sshll.u32 %s1185_s9, 4  ;;  %s1109_s14 = int_to_ptr.vmem [resolvable:$false] %s1108_s14 }
  0x7f   : > { %898 = vmatprep.subr.bf16.mxu1 %v987_v5  ;;  %v995_v13 = vld [vmem:[#allocation5 + $0xd8] sm:$0xff]   ;;  %v999_v17 = vld [vmem:[#allocation5 + $0xe0] sm:$0xff]   ;;  %v1002_v20 = vld [vmem:[#allocation5 + $0x68] sm:$0xff]   ;;  %p1111_p13 = scmp.lt.s32.totalorder %s1442_s23, %s1109_s14 }
  0x80   : > { %v996_v14 = vld [vmem:[#allocation5 + $0x18] sm:$0xff]   ;;  %v1000_v18 = vld [vmem:[#allocation5 + $0x20] sm:$0xff]   ;;  %v1003_v21 = vld [vmem:[#allocation5 + $0xe8] sm:$0xff]  }
  0x81   : > { %877 = vmatpush3.bf16.msra.mxu0 %v988_v6  ;;  %v997_v15 = vld [vmem:[#allocation5 + $0x98] sm:$0xff]   ;;  %v1001_v19 = vld [vmem:[#allocation5 + $0xa0] sm:$0xff]   ;;  %v1004_v22 = vld [vmem:[#allocation5 + $0x28] sm:$0xff]  }
  0x82   : > { %899 = vmatpush3.bf16.msra.mxu1 %v989_v7  ;;  %878 = vmatprep.subr.bf16.mxu0 %v990_v8  ;;  %v1005_v23 = vld [vmem:[#allocation5 + $0xa8] sm:$0xff]   ;;  %v1006_v24 = vld [vmem:[#allocation5 + $0x70] sm:$0xff]   ;;  %v1010_v28 = vld [vmem:[#allocation5 + $0x78] sm:$0xff]  }
  0x83   : > { %900 = vmatprep.subr.bf16.mxu1 %v991_v9  ;;  %v1007_v25 = vld [vmem:[#allocation5 + $0xf0] sm:$0xff]   ;;  %v1011_v29 = vld [vmem:[#allocation5 + $0xf8] sm:$0xff]   ;;  %v319_v32 = vld [vmem:[%s1404_s18 + $0x8] sm:$0xff] }
  0x84   : > { %v1008_v26 = vld [vmem:[#allocation5 + $0x30] sm:$0xff]   ;;  %v1012_v30 = vld [vmem:[#allocation5 + $0x38] sm:$0xff]   ;;  %v318_v34 = vld [vmem:[%s1404_s18] sm:$0xff]  ;;  %v323_v35 = vpack.c.bf16 %v319_v32, %v319_v32 }
  0x85   : > { %879 = vmatpush3.bf16.msra.mxu0 %v992_v10  ;;  %v1009_v27 = vld [vmem:[#allocation5 + $0xb0] sm:$0xff]   ;;  %v1013_v31 = vld [vmem:[#allocation5 + $0xb8] sm:$0xff]   ;;  %v322_v37 = vpack.c.bf16 %v318_v34, %v318_v34  ;;  %v834_v42 = vld [vmem:[%s1486_s2] ss:$0 sm:$0xff] }
  0x86   : > { %901 = vmatpush3.bf16.msra.mxu1 %v993_v11  ;;  %880 = vmatprep.subr.bf16.mxu0 %v994_v12  ;;  %v321_v33 = vld [vmem:[%s1404_s18 + $0x18] sm:$0xff]  ;;  %v320_v38 = vld [vmem:[%s1404_s18 + $0x10] sm:$0xff]  ;;  %v670_v51 = vld [vmem:[%s1415_s16] sm:$0xff]  ;;  %s1104_s18 = scalar_lea.vmem %s1442_s23, 64  ;;  %s1110_s16 = scalar_lea.vmem %s1109_s14, 128 }
  0x87   : > { %902 = vmatprep.subr.bf16.mxu1 %v995_v13  ;;  %v325_v36 = vpack.c.bf16 %v321_v33, %v321_v33  ;;  %v324_v39 = vpack.c.bf16 %v320_v38, %v320_v38  ;;  %621 = vmatprep.mubr.bf16.mxu0 %v323_v35  ;;  %v671_v54 = vpack.c.bf16 %v670_v51, %v670_v51  ;;  %v867_v5 = vld [vmem:[%s1488_s4] ss:$0 sm:$0xff]  ;;  %p1105_p2 = scmp.ne.s32.totalorder %s1442_s23, %s1104_s18  ;;  %p1112_p8 = scmp.lt.s32.totalorder %s1110_s16, %s1104_s18 }
  0x88   : > { %v868_v7 = vld [vmem:[%s1489_s5] ss:$0 sm:$0xff] }
  0x89   : > { %881 = vmatpush3.bf16.msra.mxu0 %v996_v14  ;;  %661 = vmatprep.mubr.bf16.mxu1 %v325_v36  ;;  %p1106_p0 = pnand %p1105_p2, %p1516_p4  ;;  %p1113_p5 = por %p1112_p8, %p1111_p13 }
  0x8a   : > { %903 = vmatpush3.bf16.msra.mxu1 %v997_v15  ;;  %882 = vmatprep.subr.bf16.mxu0 %v998_v16 }
  0x8b   : > { %904 = vmatprep.subr.bf16.mxu1 %v999_v17  ;;  %p1107_p11 = pneg %p1106_p0 }
  0x8d   : > { %883 = vmatpush3.bf16.msra.mxu0 %v1000_v18  ;;  %p1114_p7 = pnand %p1113_p5, %p1107_p11 }
  0x8e   : > { %905 = vmatpush3.bf16.msra.mxu1 %v1001_v19  ;;  %884 = vmatprep.subr.bf16.mxu0 %v1002_v20 }
  0x8f   : > { %906 = vmatprep.subr.bf16.mxu1 %v1003_v21 }
  0x91   : > { %885 = vmatpush3.bf16.msra.mxu0 %v1004_v22 }
  0x92   : > { %907 = vmatpush3.bf16.msra.mxu1 %v1005_v23  ;;  %886 = vmatprep.subr.bf16.mxu0 %v1006_v24 }
  0x93   : > { %908 = vmatprep.subr.bf16.mxu1 %v1007_v25 }
  0x95   : > { %887 = vmatpush3.bf16.msra.mxu0 %v1008_v26 }
  0x96   : > { %909 = vmatpush3.bf16.msra.mxu1 %v1009_v27  ;;  %888 = vmatprep.subr.bf16.mxu0 %v1010_v28 }
  0x97   : > { %910 = vmatprep.subr.bf16.mxu1 %v1011_v29 }
  0x99   : > { %889 = vmatpush3.bf16.msra.mxu0 %v1012_v30 }
  0x9a   : > { %911 = vmatpush3.bf16.msra.mxu1 %v1013_v31 }
  0x9c   : > { %622 = vmatmul.mubr.bf16.vlgmr.msra.gmra.mrb[0].mxu0 %v322_v37 }
  0x9d   : > { %662 = vmatmul.mubr.bf16.vlgmr.msra.gmra.mrb[0].mxu1 %v324_v39 }
 0x16f   : > { %v890_v40 = vpop.f32.mrb[0].mxu0 }
 0x170   : > { %v912_v41 = vpop.f32.mrb[0].mxu1  ;;  %v891_v43 = vpop.f32.mrb[1].mxu0 }
 0x171   : > { %v913_v44 = vpop.f32.mrb[1].mxu1  ;;  %v892_v45 = vadd.f32 %v891_v43, %v890_v40  ;;  %v893_v47 = vpop.f32.mrb[2].mxu0 }
 0x172   : > { %v914_v46 = vadd.f32 %v913_v44, %v912_v41  ;;  %v915_v48 = vpop.f32.mrb[2].mxu1  ;;  %v894_v49 = vpop.f32.mrb[3].mxu0 }
 0x173   : > { %v916_v50 = vpop.f32.mrb[3].mxu1  ;;  %v624_v52 = vadd.f32 %v892_v45, %v834_v42 }
 0x175   : > { %v664_v53 = vadd.f32 %v914_v46, %v624_v52 }
 0x177   : > { %v669_v55 = vpack.c.bf16 %v664_v53, %v664_v53 }
 0x179   : > { %v672_v56 = vadd.bf16 %v671_v54, %v669_v55 }
 0x17b   : > { %v673_v57 = vunpack.c.l.bf16 %v672_v56 }
 0x17d   : > { %674 = vadd.xlane.f32.xlu0 %v673_v57  ;;  %v676_v58 = vmul.f32 %v673_v57, %v673_v57 }
 0x181   : > { %677 = vadd.xlane.f32.xlu0 %v676_v58 }
 0x20a   : > { %v675_v59 = vpop.xlane.xlu0 %674 }
 0x20b   : > { %v679_v60 = vmul.f32 0.0078125, %v675_v59 }
 0x20d   : > { %v681_v62 = vmul.f32 %v679_v60, %v679_v60  ;;  %v686_v3 = vsub.f32 %v673_v57, %v679_v60 }
 0x20e   : > { %v678_v61 = vpop.xlane.xlu0 %677 }
 0x20f   : > { %v680_v63 = vmul.f32 0.0078125, %v678_v61 }
 0x211   : > { %v682_v0 = vsub.f32 %v680_v63, %v681_v62 }
 0x213   : > { %v683_v1 = vmax.f32 %v682_v0, 0.0 }
 0x215   : > { %v684_v2 = vadd.f32 1e-12, %v683_v1 }
 0x217   : > { %1014 = vrsqrt.f32 %v684_v2 }
 0x221   : > { %v1015_v4 = vpop.eup %1014 }
 0x222   : > { %v687_v6 = vmul.f32 %v1015_v4, %v686_v3 }
 0x224   : > { %v695_v8 = vmul.f32 %v867_v5, %v687_v6 }
 0x226   : > { %v703_v9 = vadd.f32 %v868_v7, %v695_v8 }
 0x228   : > { %v704_v10 = vpack.c.bf16 %v703_v9, %v703_v9 }
 0x22a   : > { %705 = vst [vmem:[%s316_s26] sm:$0xf] %v704_v10 }
 0x22b   : > { %1117 = shalt.err (!%p1114_p7)
}
 0x22c   : > { %s1118_s20 = scalar_lea.hbm %s1440_s7, 64  ;;  %s1122_s30 = scalar_lea.hbm %s1490_s6, 128 }
 0x22d   : > { %p1119_p9 = scmp.ne.s32.totalorder %s1440_s7, %s1118_s20  ;;  %p1123_p3 = scmp.lt.u32.totalorder %s1440_s7, %s1490_s6 }
 0x22e   : > { %p1124_p10 = scmp.lt.u32.totalorder %s1122_s30, %s1118_s20  ;;  %p1126_p2 = scmp.lt.u32.totalorder %s1118_s20, %s1440_s7 }
 0x22f   : > { %p1120_p12 = pnand %p1119_p9, %p1516_p4 }
 0x230   : > { %p1125_p1 = por %p1124_p10, %p1123_p3 }
 0x231   : > { %p1121_p6 = pneg %p1120_p12 }
 0x232   : > { %p1127_p0 = por %p1126_p2, %p1125_p1 }
 0x234   : > { %p1128_p11 = pnand %p1127_p0, %p1121_p6 }
 0x236   : > { %1131 = shalt.err (!%p1128_p11)
}
 0x237   : > { %926 = dma.vmem_to_hbm [thread:$0]  (%p1516_p4), %s1442_s23, 64, %s1440_s7, %s707_s10  }
 0x238 PF: > { %s732_s29 = sand.u32 1, %s1166_s21   ;;  %p1517_p13 = scmp.ne.s32.totalorder %s1506_s13, 0 }
 0x239   : > { %p1518_p8 = scmp.ge.s32.totalorder %s1178_s24, 2  ;;  %s733_s15 = scalar_lea.sflag [#allocation4], %s732_s29 }
 0x23b   : > { %p940_p5 = pnand %p1518_p8, %p1517_p13 }
 0x23d   : > { %1161 = dma.done.wait (!%p940_p5), %s733_s15, 64  }
 0x23e   : > { %1163 = vsyncadd (!%p940_p5), %s733_s15, 4294967232  ;;  %s1519_s19 = sld [smem:[#allocation13_spill]]  ;;  %s1520_s23 = sld [smem:[#allocation14_spill]] }
 0x23f   : > { %p20_p7 = scmp.ge.s32.totalorder %s1242_s25, 4   ;;  %s1521_s21 = smov %s1170_s22 }
 0x240   : > { %s1523_s24 = smov %s1242_s25 }
 0x241   :  { %22 = sbr.rel (!%p20_p7) target bundleno = 8 (0x8), region = 104 }
 0x244   : > { %s1522_s22 = smov %s1519_s19 }
 0x248   :  { %738 = vsyncpa [#allocation3], 1 }
 0x249   :  { %740 = vsyncpa [#allocation3 + $0x1], 1 }
 0x24a   :  { %741 = vsyncpa [#allocation6], 1 }
 0x24b   :  { %742 = vsyncpa [#allocation4], 1 }
 0x24c   :  { %744 = vsyncpa [#allocation4 + $0x1], 1 }

</bundles_post_ra>
